<compile_context>
chip_gen: v7x
topology: tpu7x:2x2x1
jax: 0.10.0
libtpu: 0.0.40
codegen_flags: <defaults>
</compile_context>

<pallas_src>
import jax
import jax.numpy as jnp
from jax.experimental import pallas as pl
from jax.experimental.pallas import tpu as pltpu

NUM_EVENTS = 29


def _round_up(n, m):
    return ((n + m - 1) // m) * m


def _wlm_kernel(x_ref, p_ref, out_ref):
    x = x_ref[...].astype(jnp.float32)                 # (T, B, D)
    T, B, D = x.shape
    p = p_ref[...]                                     # (D+2, W) f32
    W = p.shape[1]
    w = p[:D, :]                                       # (D, W) event weights (cols >= 29 zero)
    be_row = p[D:D + 1, :]                             # (1, W) [be | bc | 0...]
    wc = p[D + 1:D + 2, :D]                            # (1, D) frame-classifier weight
    bc = p[D:D + 1, NUM_EVENTS:NUM_EVENTS + 1]         # (1, 1) frame-classifier bias

    # Time-max of the features: elementwise max across the leading axis.
    max_x = jnp.max(x, axis=0)                         # (B, D)

    # Frame head (D -> 1) on the VPU/XLU, built directly in (B, T) orientation:
    # one (B, 1) lane-reduce per frame + one lane concatenate (no transpose,
    # no partial stores).
    ie_cols = [jnp.sum(x[t] * wc, axis=-1, keepdims=True) for t in range(T)]
    ie_bt = jnp.concatenate(ie_cols, axis=-1) + bc     # (B, T)

    # Event head: the single MXU matmul, kept 128-lane dense (bias added
    # full-width; the [:29] view is deferred to the softmax mask / wrapper).
    raw_full = jnp.dot(max_x, w, preferred_element_type=jnp.float32) + be_row  # (B, W)

    # Sigmoid-monotonicity rewrite of  max_t( sigmoid(ie_t) * raw ).
    sig_hi = jax.nn.sigmoid(jnp.max(ie_bt, axis=-1, keepdims=True))  # (B, 1)
    sig_lo = jax.nn.sigmoid(jnp.min(ie_bt, axis=-1, keepdims=True))  # (B, 1)
    logits = jnp.where(raw_full >= 0.0, raw_full * sig_hi, raw_full * sig_lo)  # (B, W)

    # Softmax over the 29 valid classes; pad lanes masked to -inf so all
    # downstream ops run on unmasked full vregs.
    col = jax.lax.broadcasted_iota(jnp.int32, logits.shape, 1)
    masked = jnp.where(col < NUM_EVENTS, logits, -jnp.inf)
    m = jnp.max(masked, axis=-1, keepdims=True)
    e = jnp.exp(masked - m)                            # pad lanes -> exp(-inf) = 0
    denom = jnp.sum(e, axis=-1, keepdims=True)
    r = pl.reciprocal(denom, approx=True)
    r = r * (2.0 - denom * r)                          # one Newton step -> ~f32 accurate
    scores_full = e * r                                # (B, W), pad lanes are 0

    # Single lane-dense, 128-aligned output slab; ONE unmasked full-width store:
    #   [ ie_bt | 0-pad ][ raw_full ][ scores_full ]
    ie_w = out_ref.shape[1] - 2 * W
    if ie_w > T:
        ie_block = jnp.concatenate(
            [ie_bt, jnp.zeros((B, ie_w - T), jnp.float32)], axis=-1)
    else:
        ie_block = ie_bt
    out_ref[...] = jnp.concatenate([ie_block, raw_full, scores_full], axis=-1)


def pack_wlm_params(params):
    """One-time packing of both Linear layers into a single lane-dense operand."""
    wc = jnp.asarray(params["classifier_w"], jnp.float32)          # (1, D)
    bc = jnp.asarray(params["classifier_b"], jnp.float32)          # (1,)
    we = jnp.asarray(params["event_classifier_w"], jnp.float32)    # (29, D)
    be = jnp.asarray(params["event_classifier_b"], jnp.float32)    # (29,)
    D = wc.shape[1]
    W = _round_up(max(D, NUM_EVENTS + 1), 128)
    p = jnp.zeros((D + 2, W), jnp.float32)
    p = p.at[:D, :NUM_EVENTS].set(we.T)                # event weights (columns)
    p = p.at[D, :NUM_EVENTS].set(be)                   # event bias
    p = p.at[D, NUM_EVENTS].set(bc[0])                 # frame bias
    p = p.at[D + 1, :D].set(wc[0])                     # frame weight
    return p


def weakly_localization_forward(fused_content, packed):
    """fused_content: (T, B, D) seq-first, native dtype (no wrapper astype)."""
    x = fused_content
    T, B, D = x.shape
    W = packed.shape[1]
    ie_w = _round_up(T, 128)
    out_w = ie_w + 2 * W

    vmem = pl.BlockSpec(memory_space=pltpu.MemorySpace.VMEM)
    cost = pl.CostEstimate(
        flops=2 * B * D * W + 3 * T * B * D + 8 * B * W,
        transcendentals=B * W + 3 * B,
        bytes_accessed=(x.size * x.dtype.itemsize
                        + 4 * (packed.size + B * out_w)),
    )
    slab = pl.pallas_call(
        _wlm_kernel,
        out_shape=jax.ShapeDtypeStruct((B, out_w), jnp.float32),
        in_specs=[vmem, vmem],
        out_specs=vmem,
        cost_estimate=cost,
    )(x, packed)

    is_event_scores = slab[:, :T]                                  # (B, T)
    raw_logits = slab[:, ie_w:ie_w + NUM_EVENTS]                   # (B, 29)
    event_scores = slab[:, ie_w + W:ie_w + W + NUM_EVENTS]         # (B, 29)
    return is_event_scores, raw_logits, event_scores


def _reference(fused_content, params):
    """Pure-JAX reference mirroring the PyTorch forward exactly."""
    x = jnp.transpose(fused_content, (1, 0, 2)).astype(jnp.float32)    # (B, T, D)
    max_x = jnp.max(x, axis=1)                                         # (B, D)
    # precision=HIGHEST so the reference matches the kernel's exact-f32 VPU
    # path for the D->1 frame classifier.
    is_event = (jnp.matmul(x, params["classifier_w"].T,
                           precision=jax.lax.Precision.HIGHEST)
                + params["classifier_b"])                              # (B, T, 1)
    raw = (max_x @ params["event_classifier_w"].T
           + params["event_classifier_b"])[:, None, :]                 # (B, 1, 29)
    fused = jax.nn.sigmoid(is_event) * raw                             # (B, T, 29)
    logits = jnp.max(fused, axis=1)                                    # (B, 29)
    scores = jax.nn.softmax(logits, axis=-1)
    return jnp.squeeze(is_event), jnp.squeeze(raw), scores


if __name__ == "__main__":
    T, B, D = 8, 2, 32
    key = jax.random.PRNGKey(0)
    k1, k2, k3, k4, k5 = jax.random.split(key, 5)

    fused_content = jax.random.normal(k1, (T, B, D), dtype=jnp.float32)
    # Deterministic parameters (shapes from nn.Linear(D,1) / nn.Linear(D,29)).
    params = {
        "classifier_w": 0.1 * jax.random.normal(k2, (1, D), dtype=jnp.float32),
        "classifier_b": 0.1 * jax.random.normal(k3, (1,), dtype=jnp.float32),
        "event_classifier_w": 0.1 * jax.random.normal(k4, (NUM_EVENTS, D), dtype=jnp.float32),
        "event_classifier_b": 0.1 * jax.random.normal(k5, (NUM_EVENTS,), dtype=jnp.float32),
    }

    packed = pack_wlm_params(params)                   # one-time, off the hot path
    fwd = jax.jit(weakly_localization_forward)
    outs = jax.block_until_ready(fwd(fused_content, packed))

    refs = _reference(fused_content, params)
    names = ("is_event_scores", "raw_logits", "event_scores")
    # event_scores go through the EUP approximate reciprocal (+ Newton step),
    # so they get a slightly looser tolerance.
    tols = (1e-5, 1e-5, 1e-4)
    for name, o, r, tol in zip(names, outs, refs, tols):
        assert o.shape == r.shape, (name, o.shape, r.shape)
        assert jnp.allclose(o, r, atol=tol, rtol=tol), name

    print("KERNEL_OK")
</pallas_src>

<mosaic_0001>
module attributes {stable_mosaic.version = 11 : i64} {
  func.func @_wlm_kernel(%arg0: memref<8x2x32xf32, #tpu.memory_space<vmem>>, %arg1: memref<34x128xf32, #tpu.memory_space<vmem>>, %arg2: memref<2x384xf32, #tpu.memory_space<vmem>>) attributes {dimension_semantics = [], scalar_prefetch = 0 : i64, scratch_operands = 0 : i64, tpu.core_type = #tpu.core_type<tc>} {
    %c0 = arith.constant 0 : index
    %c0_0 = arith.constant 0 : index
    %c0_1 = arith.constant 0 : index
    %0 = vector.load %arg0[%c0, %c0_0, %c0_1] : memref<8x2x32xf32, #tpu.memory_space<vmem>>, vector<8x2x32xf32>
    %c0_2 = arith.constant 0 : index
    %c0_3 = arith.constant 0 : index
    %1 = vector.load %arg1[%c0_2, %c0_3] : memref<34x128xf32, #tpu.memory_space<vmem>>, vector<34x128xf32>
    %2 = vector.extract_strided_slice %1 {offsets = [0, 0], sizes = [32, 128], strides = [1, 1]} : vector<34x128xf32> to vector<32x128xf32>
    %3 = vector.extract_strided_slice %1 {offsets = [32, 0], sizes = [1, 128], strides = [1, 1]} : vector<34x128xf32> to vector<1x128xf32>
    %4 = vector.extract_strided_slice %1 {offsets = [33, 0], sizes = [1, 32], strides = [1, 1]} : vector<34x128xf32> to vector<1x32xf32>
    %5 = vector.extract_strided_slice %1 {offsets = [32, 29], sizes = [1, 1], strides = [1, 1]} : vector<34x128xf32> to vector<1x1xf32>
    %cst = arith.constant dense<0xFF800000> : vector<2x32xf32>
    %6 = vector.multi_reduction <maximumf>, %0, %cst [0] : vector<8x2x32xf32> to vector<2x32xf32>
    %7 = vector.extract_strided_slice %0 {offsets = [0, 0, 0], sizes = [1, 2, 32], strides = [1, 1, 1]} : vector<8x2x32xf32> to vector<1x2x32xf32>
    %8 = vector.shape_cast %7 : vector<1x2x32xf32> to vector<2x32xf32>
    %9 = vector.broadcast %4 : vector<1x32xf32> to vector<2x32xf32>
    %10 = arith.mulf %8, %9 : vector<2x32xf32>
    %cst_4 = arith.constant dense<0.000000e+00> : vector<2xf32>
    %11 = vector.multi_reduction <add>, %10, %cst_4 [1] : vector<2x32xf32> to vector<2xf32>
    %12 = vector.shape_cast %11 : vector<2xf32> to vector<2x1xf32>
    %13 = vector.extract_strided_slice %0 {offsets = [1, 0, 0], sizes = [1, 2, 32], strides = [1, 1, 1]} : vector<8x2x32xf32> to vector<1x2x32xf32>
    %14 = vector.shape_cast %13 : vector<1x2x32xf32> to vector<2x32xf32>
    %15 = vector.broadcast %4 : vector<1x32xf32> to vector<2x32xf32>
    %16 = arith.mulf %14, %15 : vector<2x32xf32>
    %cst_5 = arith.constant dense<0.000000e+00> : vector<2xf32>
    %17 = vector.multi_reduction <add>, %16, %cst_5 [1] : vector<2x32xf32> to vector<2xf32>
    %18 = vector.shape_cast %17 : vector<2xf32> to vector<2x1xf32>
    %19 = vector.extract_strided_slice %0 {offsets = [2, 0, 0], sizes = [1, 2, 32], strides = [1, 1, 1]} : vector<8x2x32xf32> to vector<1x2x32xf32>
    %20 = vector.shape_cast %19 : vector<1x2x32xf32> to vector<2x32xf32>
    %21 = vector.broadcast %4 : vector<1x32xf32> to vector<2x32xf32>
    %22 = arith.mulf %20, %21 : vector<2x32xf32>
    %cst_6 = arith.constant dense<0.000000e+00> : vector<2xf32>
    %23 = vector.multi_reduction <add>, %22, %cst_6 [1] : vector<2x32xf32> to vector<2xf32>
    %24 = vector.shape_cast %23 : vector<2xf32> to vector<2x1xf32>
    %25 = vector.extract_strided_slice %0 {offsets = [3, 0, 0], sizes = [1, 2, 32], strides = [1, 1, 1]} : vector<8x2x32xf32> to vector<1x2x32xf32>
    %26 = vector.shape_cast %25 : vector<1x2x32xf32> to vector<2x32xf32>
    %27 = vector.broadcast %4 : vector<1x32xf32> to vector<2x32xf32>
    %28 = arith.mulf %26, %27 : vector<2x32xf32>
    %cst_7 = arith.constant dense<0.000000e+00> : vector<2xf32>
    %29 = vector.multi_reduction <add>, %28, %cst_7 [1] : vector<2x32xf32> to vector<2xf32>
    %30 = vector.shape_cast %29 : vector<2xf32> to vector<2x1xf32>
    %31 = vector.extract_strided_slice %0 {offsets = [4, 0, 0], sizes = [1, 2, 32], strides = [1, 1, 1]} : vector<8x2x32xf32> to vector<1x2x32xf32>
    %32 = vector.shape_cast %31 : vector<1x2x32xf32> to vector<2x32xf32>
    %33 = vector.broadcast %4 : vector<1x32xf32> to vector<2x32xf32>
    %34 = arith.mulf %32, %33 : vector<2x32xf32>
    %cst_8 = arith.constant dense<0.000000e+00> : vector<2xf32>
    %35 = vector.multi_reduction <add>, %34, %cst_8 [1] : vector<2x32xf32> to vector<2xf32>
    %36 = vector.shape_cast %35 : vector<2xf32> to vector<2x1xf32>
    %37 = vector.extract_strided_slice %0 {offsets = [5, 0, 0], sizes = [1, 2, 32], strides = [1, 1, 1]} : vector<8x2x32xf32> to vector<1x2x32xf32>
    %38 = vector.shape_cast %37 : vector<1x2x32xf32> to vector<2x32xf32>
    %39 = vector.broadcast %4 : vector<1x32xf32> to vector<2x32xf32>
    %40 = arith.mulf %38, %39 : vector<2x32xf32>
    %cst_9 = arith.constant dense<0.000000e+00> : vector<2xf32>
    %41 = vector.multi_reduction <add>, %40, %cst_9 [1] : vector<2x32xf32> to vector<2xf32>
    %42 = vector.shape_cast %41 : vector<2xf32> to vector<2x1xf32>
    %43 = vector.extract_strided_slice %0 {offsets = [6, 0, 0], sizes = [1, 2, 32], strides = [1, 1, 1]} : vector<8x2x32xf32> to vector<1x2x32xf32>
    %44 = vector.shape_cast %43 : vector<1x2x32xf32> to vector<2x32xf32>
    %45 = vector.broadcast %4 : vector<1x32xf32> to vector<2x32xf32>
    %46 = arith.mulf %44, %45 : vector<2x32xf32>
    %cst_10 = arith.constant dense<0.000000e+00> : vector<2xf32>
    %47 = vector.multi_reduction <add>, %46, %cst_10 [1] : vector<2x32xf32> to vector<2xf32>
    %48 = vector.shape_cast %47 : vector<2xf32> to vector<2x1xf32>
    %49 = vector.extract_strided_slice %0 {offsets = [7, 0, 0], sizes = [1, 2, 32], strides = [1, 1, 1]} : vector<8x2x32xf32> to vector<1x2x32xf32>
    %50 = vector.shape_cast %49 : vector<1x2x32xf32> to vector<2x32xf32>
    %51 = vector.broadcast %4 : vector<1x32xf32> to vector<2x32xf32>
    %52 = arith.mulf %50, %51 : vector<2x32xf32>
    %cst_11 = arith.constant dense<0.000000e+00> : vector<2xf32>
    %53 = vector.multi_reduction <add>, %52, %cst_11 [1] : vector<2x32xf32> to vector<2xf32>
    %54 = vector.shape_cast %53 : vector<2xf32> to vector<2x1xf32>
    %55 = tpu.concatenate %12, %18, %24, %30, %36, %42, %48, %54 in 1 : vector<2x1xf32>, vector<2x1xf32>, vector<2x1xf32>, vector<2x1xf32>, vector<2x1xf32>, vector<2x1xf32>, vector<2x1xf32>, vector<2x1xf32> -> vector<2x8xf32>
    %56 = vector.broadcast %5 : vector<1x1xf32> to vector<2x8xf32>
    %57 = arith.addf %55, %56 : vector<2x8xf32>
    %cst_12 = arith.constant dense<0.000000e+00> : vector<2x128xf32>
    %58 = tpu.matmul %6, %2, %cst_12 {dimension_numbers = #tpu.dot_dimension_numbers<[1], [0], [0], [1], [0, 0, 1, 1], [], []>} : vector<2x32xf32>, vector<32x128xf32>, vector<2x128xf32> -> vector<2x128xf32>
    %59 = vector.broadcast %3 : vector<1x128xf32> to vector<2x128xf32>
    %60 = arith.addf %58, %59 : vector<2x128xf32>
    %cst_13 = arith.constant dense<0xFF800000> : vector<2xf32>
    %61 = vector.multi_reduction <maximumf>, %57, %cst_13 [1] : vector<2x8xf32> to vector<2xf32>
    %62 = vector.shape_cast %61 : vector<2xf32> to vector<2x1xf32>
    %63 = arith.negf %62 : vector<2x1xf32>
    %64 = math.exp %63 : vector<2x1xf32>
    %cst_14 = arith.constant 1.000000e+00 : f32
    %65 = vector.broadcast %cst_14 : f32 to vector<2x1xf32>
    %66 = arith.addf %65, %64 : vector<2x1xf32>
    %67 = arith.divf %65, %66 : vector<2x1xf32>
    %cst_15 = arith.constant dense<0x7F800000> : vector<2xf32>
    %68 = vector.multi_reduction <minimumf>, %57, %cst_15 [1] : vector<2x8xf32> to vector<2xf32>
    %69 = vector.shape_cast %68 : vector<2xf32> to vector<2x1xf32>
    %70 = arith.negf %69 : vector<2x1xf32>
    %71 = math.exp %70 : vector<2x1xf32>
    %cst_16 = arith.constant 1.000000e+00 : f32
    %72 = vector.broadcast %cst_16 : f32 to vector<2x1xf32>
    %73 = arith.addf %72, %71 : vector<2x1xf32>
    %74 = arith.divf %72, %73 : vector<2x1xf32>
    %cst_17 = arith.constant 0.000000e+00 : f32
    %75 = vector.broadcast %cst_17 : f32 to vector<2x128xf32>
    %76 = arith.cmpf oge, %60, %75 : vector<2x128xf32>
    %77 = vector.broadcast %67 : vector<2x1xf32> to vector<2x128xf32>
    %78 = arith.mulf %60, %77 : vector<2x128xf32>
    %79 = vector.broadcast %74 : vector<2x1xf32> to vector<2x128xf32>
    %80 = arith.mulf %60, %79 : vector<2x128xf32>
    %81 = arith.select %76, %78, %80 : vector<2x128xi1>, vector<2x128xf32>
    %82 = tpu.iota {dimensions = array<i32: 1>} : vector<2x128xi32>
    %c29_i32 = arith.constant 29 : i32
    %83 = vector.broadcast %c29_i32 : i32 to vector<2x128xi32>
    %84 = arith.cmpi slt, %82, %83 : vector<2x128xi32>
    %cst_18 = arith.constant 0xFF800000 : f32
    %85 = vector.broadcast %cst_18 : f32 to vector<2x128xf32>
    %86 = arith.select %84, %81, %85 : vector<2x128xi1>, vector<2x128xf32>
    %cst_19 = arith.constant dense<0xFF800000> : vector<2xf32>
    %87 = vector.multi_reduction <maximumf>, %86, %cst_19 [1] : vector<2x128xf32> to vector<2xf32>
    %88 = vector.shape_cast %87 : vector<2xf32> to vector<2x1xf32>
    %89 = vector.broadcast %88 : vector<2x1xf32> to vector<2x128xf32>
    %90 = arith.subf %86, %89 : vector<2x128xf32>
    %91 = math.exp %90 : vector<2x128xf32>
    %cst_20 = arith.constant dense<0.000000e+00> : vector<2xf32>
    %92 = vector.multi_reduction <add>, %91, %cst_20 [1] : vector<2x128xf32> to vector<2xf32>
    %93 = vector.shape_cast %92 : vector<2xf32> to vector<2x1xf32>
    %94 = tpu.reciprocal %93 {approx = true} : vector<2x1xf32> -> vector<2x1xf32>
    %95 = arith.mulf %93, %94 : vector<2x1xf32>
    %cst_21 = arith.constant 2.000000e+00 : f32
    %96 = vector.broadcast %cst_21 : f32 to vector<2x1xf32>
    %97 = arith.subf %96, %95 : vector<2x1xf32>
    %98 = arith.mulf %94, %97 : vector<2x1xf32>
    %99 = vector.broadcast %98 : vector<2x1xf32> to vector<2x128xf32>
    %100 = arith.mulf %91, %99 : vector<2x128xf32>
    %cst_22 = arith.constant 0.000000e+00 : f32
    %101 = vector.broadcast %cst_22 : f32 to vector<2x120xf32>
    %102 = tpu.concatenate %57, %101 in 1 : vector<2x8xf32>, vector<2x120xf32> -> vector<2x128xf32>
    %103 = tpu.concatenate %102, %60, %100 in 1 : vector<2x128xf32>, vector<2x128xf32>, vector<2x128xf32> -> vector<2x384xf32>
    %c0_23 = arith.constant 0 : index
    %c0_24 = arith.constant 0 : index
    %104 = vector.load %arg2[%c0_23, %c0_24] : memref<2x384xf32, #tpu.memory_space<vmem>>, vector<2x384xf32>
    tpu.vector_store %arg2[%c0_23, %c0_24], %103 {strides = array<i32>} : memref<2x384xf32, #tpu.memory_space<vmem>>, vector<2x384xf32>,
    return
  }
}

</mosaic_0001>

<bundles_post_ra>
// kernel: weakly_localization_forward.1
= control target key start
LH: loop header
LB: loop body
LE: loop exit
PB: predicated region body
PF: predicated region fallthrough
CT: control target
= control target key end

     0   :  { %7 = vsyncpa [#allocation3], 0  ;;  %s453_s0 = inlined_call_operand.hbm [shape: f32[8,2,32], index: 0, kind: input, shape index: {}]   ;;  %s454_s1 = inlined_call_operand.hbm [shape: f32[34,128], index: 1, kind: input, shape index: {}]   ;;  %s455_s2 = inlined_call_operand.vmem [shape: f32[2,384], index: 2, kind: output, shape index: {}]  }
   0x1   :  { %8 = vsyncpa [#allocation5], 0  ;;  %s372_s9 = smov [#allocation2]   ;;  %s324_s13 = scalar_lea.hbm %s453_s0, 256 }
   0x2   :  { %s14_s10 = sshll.u32 %s372_s9, 4  ;;  %p325_p0 = scmp.ne.s32.totalorder %s453_s0, %s324_s13  ;;  %s15_s10 = int_to_ptr.vmem [resolvable:$true] %s14_s10 }
   0x3   :  { %p328_p1 = scmp.lt.u32.totalorder %s324_s13, %s453_s0 }
   0x5   :  { %p330_p2 = pnand %p328_p1, %p325_p0 }
   0x7   :  { %333 = shalt.err (!%p330_p2)
}
   0x8   :  { %s334_s18 = scalar_lea.vmem %s15_s10, 256  ;;  %p339_p4 = scmp.lt.s32.totalorder %s15_s10, %s15_s10 }
   0x9   :  { %p335_p3 = scmp.ne.s32.totalorder %s15_s10, %s334_s18  ;;  %p340_p5 = scmp.lt.s32.totalorder %s334_s18, %s334_s18 }
   0xb   :  { %p341_p6 = por %p340_p5, %p339_p4 }
   0xd   :  { %p342_p7 = pnand %p341_p6, %p335_p3 }
   0xf   :  { %345 = shalt.err (!%p342_p7)
}
  0x10   :  { %s373_s19 = smov 32   ;;  %s374_s20 = smov 2  }
  0x11   :  { %20 = dma.hbm_to_vmem [thread:$0]  %s453_s0, 256, %s15_s10, [#allocation3], %s373_s19, %s373_s19, %s374_s20  }
  0x12   :  { %s375_s23 = smov [#allocation4]   ;;  %s346_s27 = scalar_lea.hbm %s454_s1, 640 }
  0x13   :  { %s26_s24 = sshll.u32 %s375_s23, 4  ;;  %p347_p8 = scmp.ne.s32.totalorder %s454_s1, %s346_s27  ;;  %s27_s24 = int_to_ptr.vmem [resolvable:$true] %s26_s24 }
  0x14   :  { %p350_p9 = scmp.lt.u32.totalorder %s346_s27, %s454_s1 }
  0x16   :  { %p352_p10 = pnand %p350_p9, %p347_p8 }
  0x18   :  { %355 = shalt.err (!%p352_p10)
}
  0x19   :  { %s356_s4 = scalar_lea.vmem %s27_s24, 640  ;;  %p361_p12 = scmp.lt.s32.totalorder %s27_s24, %s27_s24 }
  0x1a   :  { %p357_p11 = scmp.ne.s32.totalorder %s27_s24, %s356_s4  ;;  %p362_p13 = scmp.lt.s32.totalorder %s356_s4, %s356_s4 }
  0x1c   :  { %p363_p0 = por %p362_p13, %p361_p12 }
  0x1e   :  { %p364_p1 = pnand %p363_p0, %p357_p11 }
  0x20   :  { %367 = shalt.err (!%p364_p1)
}
  0x21   :  { %s376_s0 = smov 128   ;;  %s377_s5 = smov 8  }
  0x22   :  { %32 = dma.hbm_to_vmem [thread:$0]  %s454_s1, 640, %s27_s24, [#allocation5], %s376_s0, %s376_s0, %s377_s5  }
  0x23   :  { %368 = dma.done.wait [#allocation3], 256  }
  0x24   :  { %369 = vsyncadd [#allocation3], 4294967040 }
  0x25   :  { %370 = dma.done.wait [#allocation5], 640  }
  0x26   :  { %371 = vsyncadd [#allocation5], 4294966656  ;;  %v68_v0 = vlaneseq  ;;  %v378_v1 = vmov 0.0|0.0   ;;  %vm379_vm0 = vmmov 0   ;;  %v380_v2 = vmov 0.0   ;;  %v47_v6 = vld [vmem:[#allocation4] sm:$0xff] }
  0x27   :  { %293 = vmatprep.subr.bf16.mxu0 %v378_v1  ;;  %290 = vmatprep.mubr.msk.f32.mxu0 %vm379_vm0, %v380_v2  ;;  %v426_v5 = vld [vmem:[#allocation4 + $0x20] sm:$0x3]  ;;  %v48_v7 = vld [vmem:[#allocation4 + $0x8] sm:$0xff]  ;;  %s381_s1 = smov 99   ;;  %v49_v10 = vld [vmem:[#allocation4 + $0x10] sm:$0xff]  ;;  %vm52_vm1 = vcmask 254976  }
  0x28   :  { %v423_v3 = vshrl.u32 %v68_v0, 7  ;;  %119 = vrot.lane.b32.xlu0 %v426_v5, %s381_s1  ;;  %v294_v9 = vpack.c.bf16 %v48_v7, %v47_v6  ;;  %v50_v11 = vld [vmem:[#allocation4 + $0x18] sm:$0xff]  ;;  %v39_v12 = vld [vmem:[#allocation2] sm:$0x3]  ;;  %v40_v13 = vld [vmem:[#allocation2 + $0x2] sm:$0x3] }
  0x29   :  { %v41_v14 = vld [vmem:[#allocation2 + $0x4] sm:$0x3]  ;;  %v42_v15 = vld [vmem:[#allocation2 + $0x6] sm:$0x3]  ;;  %v297_v16 = vpack.c.bf16 %v50_v11, %v49_v10  ;;  %v43_v17 = vld [vmem:[#allocation2 + $0x8] sm:$0x3] }
  0x2a   :  { %v70_v4 = vsub.s32 1, %v423_v3  ;;  %295 = vmatpush3.bf16.msra.mxu0 %v294_v9  ;;  %v44_v18 = vld [vmem:[#allocation2 + $0xa] sm:$0x3]  ;;  %v45_v19 = vld [vmem:[#allocation2 + $0xc] sm:$0x3]  ;;  %v53_v23 = vsel %vm52_vm1, %v39_v12, -inf }
  0x2b   :  { %296 = vmatprep.subr.bf16.mxu0 %v378_v1  ;;  %v46_v22 = vld [vmem:[#allocation2 + $0xe] sm:$0x3]  ;;  %v54_v24 = vsel %vm52_vm1, %v40_v13, -inf  ;;  %v55_v25 = vsel %vm52_vm1, %v41_v14, -inf  ;;  %v56_v26 = vsel %vm52_vm1, %v42_v15, -inf  ;;  %v57_v27 = vsel %vm52_vm1, %v43_v17, -inf }
  0x2c   :  { %v71_v8 = vrot.slane %v426_v5, %v70_v4  ;;  %v59_v28 = vsel %vm52_vm1, %v44_v18, -inf  ;;  %v61_v29 = vsel %vm52_vm1, %v45_v19, -inf  ;;  %v63_v30 = vsel %vm52_vm1, %v46_v22, -inf }
  0x2d   :  { %v58_v31 = vmax.f32 %v53_v23, %v57_v27  ;;  %v60_v32 = vmax.f32 %v54_v24, %v59_v28  ;;  %v62_v33 = vmax.f32 %v55_v25, %v61_v29  ;;  %v64_v34 = vmax.f32 %v56_v26, %v63_v30 }
  0x2e   :  { %v76_v20 = vmul.f32 %v71_v8, %v40_v13  ;;  %v80_v21 = vmul.f32 %v71_v8, %v41_v14  ;;  %298 = vmatpush3.bf16.msra.mxu0 %v297_v16  ;;  %vm129_vm2 = vcmask 261120   ;;  %v84_v39 = vmul.f32 %v71_v8, %v42_v15 }
  0x2f   :  { %v65_v36 = vmax.f32 %v58_v31, %v60_v32  ;;  %v66_v37 = vmax.f32 %v62_v33, %v64_v34  ;;  %v88_v42 = vmul.f32 %v71_v8, %v43_v17  ;;  %v92_v44 = vmul.f32 %v71_v8, %v44_v18 }
  0x30   :  { %v77_v35 = vsel %vm52_vm1, %v76_v20, 0.0  ;;  %v81_v38 = vsel %vm52_vm1, %v80_v21, 0.0  ;;  %v85_v41 = vsel %vm52_vm1, %v84_v39, 0.0  ;;  %v96_v46 = vmul.f32 %v71_v8, %v45_v19 }
  0x31   :  { %78 = vadd.xlane.f32.xlu1 %v77_v35  ;;  %v67_v40 = vmax.f32 %v65_v36, %v66_v37  ;;  %v89_v43 = vsel %vm52_vm1, %v88_v42, 0.0  ;;  %v93_v45 = vsel %vm52_vm1, %v92_v44, 0.0  ;;  %v72_v47 = vmul.f32 %v71_v8, %v39_v12 }
  0x32   :  { %v97_v48 = vsel %vm52_vm1, %v96_v46, 0.0  ;;  %v100_v49 = vmul.f32 %v71_v8, %v46_v22  ;;  %vm104_vm3 = vcmask 7168   ;;  %vm106_vm4 = vcmask 15360  }
  0x33   :  { %291 = vmatmul.mubr.msk.f32.vlgmr.msra.gmra.mrb[0].mxu0 %vm129_vm2, %v67_v40  ;;  %v73_v50 = vsel %vm52_vm1, %v72_v47, 0.0  ;;  %vm108_vm5 = vcmask 23552   ;;  %vm110_vm6 = vcmask 31744   ;;  %vm112_vm7 = vcmask 39936  }
  0x34   :  { %v101_v51 = vsel %vm52_vm1, %v100_v49, 0.0  ;;  %vm114_vm8 = vcmask 48128   ;;  %vm116_vm9 = vcmask 56320   ;;  %vm203_vm10 = vcmask 58368  }
  0x35   :  { %82 = vadd.xlane.f32.xlu1 %v81_v38  ;;  %v127_v11 = vsub.s32 0, %v423_v3  ;;  %v227_v24 = vand.u32 127, %v68_v0  ;;  %vm230_vm13 = vcmask 1041408   ;;  %v382_v0 = vmov 1983009808  }
  0x36   :  { %v252_v37 = vunpack.c.l.s4 %v382_v0  ;;  %vm245_vm14 = vcmask 64512  }
  0x37   :  { %v128_v12 = vrot.slane %v426_v5, %v127_v11  ;;  %vm228_vm12 = vcmp.lt.s32.totalorder %v227_v24, 29 }
  0x38   :  { %v253_v39 = vunpack.c.0.s8 %v252_v37 }
  0x39   :  { %86 = vadd.xlane.f32.xlu1 %v85_v41 }
  0x3a   :  { %v256_v44 = vsub.s32 %v253_v39, %v423_v3 }
  0x3d   :  { %90 = vadd.xlane.f32.xlu1 %v89_v43 }
  0x41   :  { %94 = vadd.xlane.f32.xlu1 %v93_v45 }
  0x45   :  { %98 = vadd.xlane.f32.xlu1 %v97_v48 }
  0x47   :  { %74 = vadd.xlane.f32.xlu0 %v73_v50 }
  0x49   :  { %102 = vadd.xlane.f32.xlu1 %v101_v51 }
  0x9a   :  { %v120_v52 = vpop.permute.xlu0 %119 }
  0x9b   :  { %299 = vpush %v120_v52 }
  0xbe   :  { %v79_v53 = vpop.xlane.xlu1 %78 }
  0xc2   :  { %v83_v54 = vpop.xlane.xlu1 %82 }
  0xc6   :  { %v87_v55 = vpop.xlane.xlu1 %86 }
  0xca   :  { %v91_v56 = vpop.xlane.xlu1 %90 }
  0xcc   :  { %s300_s8 = spop %299 }
  0xcd   :  { %v122_v6 = vstv %s300_s8 }
  0xce   :  { %v95_v57 = vpop.xlane.xlu1 %94 }
  0xd2   :  { %v99_v58 = vpop.xlane.xlu1 %98 }
  0xd4   :  { %v75_v59 = vpop.xlane.xlu0 %74 }
  0xd5   :  { %v105_v60 = vsel %vm104_vm3, %v75_v59, %v79_v53 }
  0xd6   :  { %v107_v61 = vsel %vm106_vm4, %v105_v60, %v83_v54  ;;  %v103_v1 = vpop.xlane.xlu1 %102 }
  0xd7   :  { %v109_v62 = vsel %vm108_vm5, %v107_v61, %v87_v55 }
  0xd8   :  { %v111_v63 = vsel %vm110_vm6, %v109_v62, %v91_v56 }
  0xd9   :  { %v113_v2 = vsel %vm112_vm7, %v111_v63, %v95_v57 }
  0xda   :  { %v115_v4 = vsel %vm114_vm8, %v113_v2, %v99_v58 }
  0xdb   :  { %v117_v7 = vsel %vm116_vm9, %v115_v4, %v103_v1 }
  0xdc   :  { %v124_v8 = vadd.f32 %v122_v6, %v117_v7 }
  0xde   :  { %v204_v9 = vsel %vm203_vm10, %v124_v8, -inf  ;;  %v213_v10 = vsel %vm203_vm10, %v124_v8, inf  ;;  %v246_v42 = vsel %vm245_vm14, %v124_v8, 0.0 }
  0xdf   :  { %205 = vmax.xlane.f32.xlu1 %v204_v9 }
  0xe3   :  { %214 = vmin.xlane.f32.xlu1 %v213_v10 }
 0x106   :  { %v199_v13 = vpop.f32.mrb[0].mxu0 }
 0x107   :  { %v200_v14 = vadd.f32 %v199_v13, %v128_v12  ;;  %v292_v15 = vpop.f32.mrb[1].mxu0 }
 0x109   :  { %vm222_vm11 = vcmp.ge.f32.partialorder %v200_v14, 0.0  ;;  %v250_v43 = vcombine.low %v246_v42, %v200_v14 }
 0x10b   :  { %v257_v47 = vrot.slane %v250_v43, %v256_v44 }
 0x16c   :  { %v206_v16 = vpop.xlane.xlu1 %205 }
 0x16d   :  { %v275_v17 = vmul.f32 -1.442695, %v206_v16 }
 0x16f   :  { %312 = vpow2.f32 %v275_v17 }
 0x170   :  { %v215_v18 = vpop.xlane.xlu1 %214 }
 0x171   :  { %v276_v19 = vmul.f32 -1.442695, %v215_v18 }
 0x173   :  { %314 = vpow2.f32 %v276_v19 }
 0x179   :  { %v313_v20 = vpop.eup %312 }
 0x17a   :  { %v210_v21 = vadd.f32 1.0, %v313_v20 }
 0x17c   :  { %316 = vrcp.f32 %v210_v21 }
 0x17d   :  { %v315_v22 = vpop.eup %314 }
 0x17e   :  { %v219_v23 = vadd.f32 1.0, %v315_v22 }
 0x180   :  { %318 = vrcp.f32 %v219_v23 }
 0x186   :  { %v317_v25 = vpop.eup %316 }
 0x187   :  { %v223_v5 = vmul.f32 %v317_v25, %v200_v14 }
 0x18a   :  { %v319_v26 = vpop.eup %318 }
 0x18b   :  { %v224_v27 = vmul.f32 %v319_v26, %v200_v14 }
 0x18d   :  { %v225_v28 = vsel %vm222_vm11, %v223_v5, %v224_v27 }
 0x18e   :  { %v229_v29 = vsel %vm228_vm12, %v225_v28, -inf }
 0x18f   :  { %v231_v30 = vsel %vm230_vm13, %v229_v29, -inf }
 0x190   :  { %232 = vmax.xlane.f32.xlu0 %v231_v30 }
 0x21d   :  { %v233_v31 = vpop.xlane.xlu0 %232 }
 0x21e   :  { %v234_v32 = vsub.f32 %v229_v29, %v233_v31 }
 0x220   :  { %v235_v33 = vmul.f32 1.442695, %v234_v32 }
 0x222   :  { %320 = vpow2.f32 %v235_v33 }
 0x22c   :  { %v321_v34 = vpop.eup %320 }
 0x22d   :  { %v237_v35 = vsel %vm230_vm13, %v321_v34, 0.0 }
 0x22e   :  { %238 = vadd.xlane.f32.xlu1 %v237_v35 }
 0x2bb   :  { %v239_v36 = vpop.xlane.xlu1 %238 }
 0x2bc   :  { %322 = vrcp.f32 %v239_v36 }
 0x2c6   :  { %v323_v38 = vpop.eup %322 }
 0x2c7   :  { %v241_v40 = vmul.f32 %v323_v38, %v239_v36 }
 0x2c9   :  { %v242_v41 = vsub.f32 2.0, %v241_v40 }
 0x2cb   :  { %v243_v45 = vmul.f32 %v323_v38, %v242_v41 }
 0x2cd   :  { %v244_v46 = vmul.f32 %v321_v34, %v243_v45 }
 0x2cf   :  { %v264_v48 = vrot.slane %v244_v46, %v256_v44 }
 0x2d1   :  { %v265_v49 = vcombine.low %v257_v47, %v264_v48 }
 0x2d3   :  { %267 = vst [vmem:[%s455_s2] sm:$0x3f] %v265_v49 }
 0x2d4   :  { %272 = vsyncpa [#allocation3], 1 }
 0x2d5   :  { %273 = vsyncpa [#allocation5], 1 }

</bundles_post_ra>
